<compile_context>
chip_gen: v5e
topology: v5e:2x2
jax: 0.10.0
libtpu: 0.0.40
codegen_flags: <defaults>
</compile_context>

<pallas_src>
import functools

import jax
import jax.numpy as jnp
from jax import lax
from jax.experimental import pallas as pl
from jax.experimental.pallas import tpu as pltpu

_VMEM_LIMIT = 32 * 1024 * 1024  # safe on v5e/v6e (128 MiB) and v7x (64 MiB phys)


def _round_up(x, m):
    return (x + m - 1) // m * m


def _pick_tile(size, target):
    """Full-extent block for small dims, otherwise the (8,128)-aligned target."""
    return size if size <= target else target


def _pick_seq_tile(n, prefer=(512, 256, 128)):
    """Sequence tile that divides n exactly (no kv masking needed)."""
    if n <= prefer[0]:
        return n
    for t in prefer:
        if n % t == 0:
            return t
    # TODO(synk): masked kv tiles for ragged sequence lengths; fall back to one block.
    return n


# ---------------------------------------------------------------------------
# Tiled linear kernels:  (M, K) @ (K, N) [+ bias] -> (M, N)
# grid = (M//tm, N//tn, K//tk); f32 accumulator resident across the K axis.
# ---------------------------------------------------------------------------
def _linear_kernel(x_ref, w_ref, o_ref, acc_ref):
    @pl.when(pl.program_id(2) == 0)
    def _():
        acc_ref[...] = jnp.zeros_like(acc_ref)

    acc_ref[...] += jnp.dot(x_ref[...], w_ref[...],
                            preferred_element_type=jnp.float32)

    @pl.when(pl.program_id(2) == pl.num_programs(2) - 1)
    def _():
        o_ref[...] = acc_ref[...].astype(o_ref.dtype)


def _linear_bias_kernel(x_ref, w_ref, b_ref, o_ref, acc_ref):
    @pl.when(pl.program_id(2) == 0)
    def _():
        acc_ref[...] = jnp.zeros_like(acc_ref)

    acc_ref[...] += jnp.dot(x_ref[...], w_ref[...],
                            preferred_element_type=jnp.float32)

    @pl.when(pl.program_id(2) == pl.num_programs(2) - 1)
    def _():
        o_ref[...] = (acc_ref[...] + b_ref[...].astype(jnp.float32)
                      ).astype(o_ref.dtype)


def pallas_linear(x2d, w, bias=None, *, tm=256, tn=256, tk=256):
    M, K = x2d.shape
    K2, N = w.shape
    assert K == K2

    tm = _pick_tile(M, tm)   # full dim when small -> always a legal block
    tk = _pick_tile(K, tk)   # 256 is a multiple of (8, 128) when tiled
    tn = _pick_tile(N, tn)
    Mp, Kp, Np = _round_up(M, tm), _round_up(K, tk), _round_up(N, tn)

    xp = x2d if (Mp, Kp) == (M, K) else jnp.pad(x2d, ((0, Mp - M), (0, Kp - K)))
    wp = w if (Kp, Np) == (K, N) else jnp.pad(w, ((0, Kp - K), (0, Np - N)))

    in_specs = [
        pl.BlockSpec((tm, tk), lambda i, j, kk: (i, kk)),
        pl.BlockSpec((tk, tn), lambda i, j, kk: (kk, j)),
    ]
    args = (xp, wp)
    kernel = _linear_kernel
    if bias is not None:
        bp = bias.reshape(1, N)
        if Np != N:
            bp = jnp.pad(bp, ((0, 0), (0, Np - N)))
        in_specs.append(pl.BlockSpec((1, tn), lambda i, j, kk: (0, j)))
        args = (xp, wp, bp)
        kernel = _linear_bias_kernel

    itemsize = jnp.dtype(x2d.dtype).itemsize
    cost = pl.CostEstimate(
        flops=2 * M * N * K,
        transcendentals=0,
        bytes_accessed=(M * K + K * N + M * N + (N if bias is not None else 0)) * itemsize,
    )

    out = pl.pallas_call(
        kernel,
        out_shape=jax.ShapeDtypeStruct((Mp, Np), x2d.dtype),
        grid_spec=pltpu.PrefetchScalarGridSpec(
            num_scalar_prefetch=0,
            grid=(Mp // tm, Np // tn, Kp // tk),
            in_specs=in_specs,
            out_specs=pl.BlockSpec((tm, tn), lambda i, j, kk: (i, j)),
            scratch_shapes=[pltpu.VMEM((tm, tn), jnp.float32)],
        ),
        compiler_params=pltpu.CompilerParams(
            dimension_semantics=("parallel", "parallel", "arbitrary"),
            vmem_limit_bytes=_VMEM_LIMIT,
        ),
        cost_estimate=cost,
    )(*args)

    if (Mp, Np) != (M, N):
        out = out[:M, :N]
    return out


# ---------------------------------------------------------------------------
# Attention core: all H heads per grid step, online softmax over kv blocks,
# output stored lane-dense in (b, n, h*d) layout.
#   q: (B, H, Nq, D)  k, v: (B, H, Nk, D)  ->  out: (B, Nq, H*D)
# grid = (B, Nq//tq, Nk//tk)
# ---------------------------------------------------------------------------
def _attn_kernel(q_ref, k_ref, v_ref, o_ref, m_sc, l_sc, acc_sc, *, scale):
    kv = pl.program_id(2)

    @pl.when(kv == 0)
    def _():
        m_sc[...] = jnp.full(m_sc.shape, -jnp.inf, m_sc.dtype)
        l_sc[...] = jnp.zeros(l_sc.shape, l_sc.dtype)
        acc_sc[...] = jnp.zeros(acc_sc.shape, acc_sc.dtype)

    q = q_ref[0]                       # (H, tq, D), native dtype
    k = k_ref[0]                       # (H, tk, D)
    v = v_ref[0]                       # (H, tk, D)

    # Fold the softmax scale into q (touches Nq*D instead of Nq*Nk elements).
    qs = q * scale

    # q @ k^T batched over heads, contracting on D (no transpose materialized).
    s = lax.dot_general(
        qs, k,
        dimension_numbers=(((2,), (2,)), ((0,), (0,))),
        preferred_element_type=jnp.float32)          # (H, tq, tk) f32

    m_prev = m_sc[...]                               # (H, tq, 1)
    m_new = jnp.maximum(m_prev, jnp.max(s, axis=-1, keepdims=True))
    alpha = jnp.exp(m_prev - m_new)
    p = jnp.exp(s - m_new)                           # (H, tq, tk) f32

    l_sc[...] = alpha * l_sc[...] + jnp.sum(p, axis=-1, keepdims=True)
    pv = lax.dot_general(
        p.astype(v.dtype), v,
        dimension_numbers=(((2,), (1,)), ((0,), (0,))),
        preferred_element_type=jnp.float32)          # (H, tq, D) f32
    acc_sc[...] = alpha * acc_sc[...] + pv
    m_sc[...] = m_new

    @pl.when(kv == pl.num_programs(2) - 1)
    def _():
        inv = pl.reciprocal(l_sc[...], approx=True)  # EUP slot, ~free
        out = acc_sc[...] * inv                      # (H, tq, D) f32
        # merge heads inside the kernel: (H, tq, D) -> (tq, H*D) lane-dense store
        out = jnp.transpose(out, (1, 0, 2)).reshape(out.shape[1], -1)
        o_ref[0] = out.astype(o_ref.dtype)


def pallas_attention(q, k, v, scale):
    B, H, Nq, D = q.shape
    Nk = k.shape[2]
    tq = _pick_seq_tile(Nq)
    tk = _pick_seq_tile(Nk)

    itemsize = jnp.dtype(q.dtype).itemsize
    cost = pl.CostEstimate(
        flops=4 * B * H * Nq * Nk * D,
        transcendentals=B * H * Nq * Nk,
        bytes_accessed=(2 * q.size + k.size + v.size) * itemsize,
    )

    kern = functools.partial(_attn_kernel, scale=scale)
    return pl.pallas_call(
        kern,
        out_shape=jax.ShapeDtypeStruct((B, Nq, H * D), q.dtype),
        grid_spec=pltpu.PrefetchScalarGridSpec(
            num_scalar_prefetch=0,
            grid=(B, Nq // tq, Nk // tk),
            in_specs=[
                pl.BlockSpec((1, H, tq, D), lambda b, qi, ki: (b, 0, qi, 0)),
                pl.BlockSpec((1, H, tk, D), lambda b, qi, ki: (b, 0, ki, 0)),
                pl.BlockSpec((1, H, tk, D), lambda b, qi, ki: (b, 0, ki, 0)),
            ],
            out_specs=pl.BlockSpec((1, tq, H * D), lambda b, qi, ki: (b, qi, 0)),
            scratch_shapes=[
                pltpu.VMEM((H, tq, 1), jnp.float32),   # running max
                pltpu.VMEM((H, tq, 1), jnp.float32),   # running denom
                pltpu.VMEM((H, tq, D), jnp.float32),   # running accumulator
            ],
        ),
        compiler_params=pltpu.CompilerParams(
            dimension_semantics=("parallel", "parallel", "arbitrary"),
            vmem_limit_bytes=_VMEM_LIMIT,
        ),
        cost_estimate=cost,
    )(q, k, v)


# ---------------------------------------------------------------------------
# Module: parameter init + forward
# ---------------------------------------------------------------------------
def init_attention_params(key, dim, heads, dim_head):
    inner = heads * dim_head
    k1, k2, k3 = jax.random.split(key, 3)
    return {
        "wq": 0.02 * jax.random.normal(k1, (dim, inner), jnp.float32),
        "wkv": 0.02 * jax.random.normal(k2, (dim, 2 * inner), jnp.float32),
        "wo": 0.02 * jax.random.normal(k3, (inner, dim), jnp.float32),
        "bo": jnp.zeros((dim,), jnp.float32),
    }


def attention_forward(params, x, heads, dim_head, context=None,
                      kv_include_self=False):
    b, n, dim = x.shape
    inner = heads * dim_head
    self_attn = (context is None) and (not kv_include_self)

    if context is None:
        context = x
    if kv_include_self:
        context = jnp.concatenate([x, context], axis=1)
    nk = context.shape[1]

    if self_attn:
        # Fused Q/KV projection: read x from HBM once.
        w_qkv = jnp.concatenate([params["wq"], params["wkv"]], axis=1)
        qkv = pallas_linear(x.reshape(b * n, dim), w_qkv).reshape(b, n, 3 * inner)
        q = qkv[..., :inner]
        k = qkv[..., inner:2 * inner]
        v = qkv[..., 2 * inner:]
    else:
        q = pallas_linear(x.reshape(b * n, dim), params["wq"]).reshape(b, n, inner)
        kv = pallas_linear(context.reshape(b * nk, dim),
                           params["wkv"]).reshape(b, nk, 2 * inner)
        k, v = kv[..., :inner], kv[..., inner:]

    # rearrange 'b n (h d) -> b h n d'
    def split_heads(t, seq):
        return t.reshape(b, seq, heads, dim_head).transpose(0, 2, 1, 3)

    qh, kh, vh = split_heads(q, n), split_heads(k, nk), split_heads(v, nk)

    scale = float(dim_head) ** (-0.5)
    # kernel returns (b, n, heads*dim_head) directly -- no merge transpose.
    out = pallas_attention(qh, kh, vh, scale)

    # to_out: Linear(inner, dim) with fused bias; Dropout(0.0) is the identity.
    y = pallas_linear(out.reshape(b * n, inner), params["wo"],
                      bias=params["bo"]).reshape(b, n, dim)
    return y


# ---------------------------------------------------------------------------
# Pure-JAX reference (mirrors the PyTorch forward) for a sanity check
# ---------------------------------------------------------------------------
def attention_reference(params, x, heads, dim_head):
    b, n, dim = x.shape
    inner = heads * dim_head
    q = x @ params["wq"]
    kv = x @ params["wkv"]
    k, v = kv[..., :inner], kv[..., inner:]

    def sh(t):
        return t.reshape(b, n, heads, dim_head).transpose(0, 2, 1, 3)

    q, k, v = sh(q), sh(k), sh(v)
    dots = jnp.einsum("bhid,bhjd->bhij", q, k) * (float(dim_head) ** -0.5)
    attn = jax.nn.softmax(dots, axis=-1)
    out = jnp.einsum("bhij,bhjd->bhid", attn, v)
    out = out.transpose(0, 2, 1, 3).reshape(b, n, inner)
    return out @ params["wo"] + params["bo"]


if __name__ == "__main__":
    key = jax.random.PRNGKey(0)
    dim, heads, dim_head = 32, 4, 8       # inner_dim = 32
    b, n = 2, 8

    kp, kx = jax.random.split(key)
    params = init_attention_params(kp, dim, heads, dim_head)
    x = jax.random.normal(kx, (b, n, dim), jnp.float32)

    y = attention_forward(params, x, heads, dim_head)
    y = jax.block_until_ready(y)

    y_ref = attention_reference(params, x, heads, dim_head)
    assert y.shape == (b, n, dim)
    max_err = float(jnp.max(jnp.abs(y - y_ref)))
    # approx reciprocal (EUP) loosens tolerance slightly vs exact divide.
    assert jnp.allclose(y, y_ref, atol=2e-3, rtol=2e-3), f"mismatch vs reference: {max_err}"

    print("KERNEL_OK")
</pallas_src>

<mosaic_0001>
module attributes {stable_mosaic.version = 11 : i64} {
  func.func @_linear_kernel(%arg0: i32, %arg1: i32, %arg2: i32, %arg3: memref<16x32xf32, #tpu.memory_space<vmem>>, %arg4: memref<32x96xf32, #tpu.memory_space<vmem>>, %arg5: memref<16x96xf32, #tpu.memory_space<vmem>>, %arg6: memref<16x96xf32, #tpu.memory_space<vmem>>) attributes {dimension_semantics = [#tpu.dimension_semantics<parallel>, #tpu.dimension_semantics<parallel>, #tpu.dimension_semantics<arbitrary>], iteration_bounds = array<i64: 1, 1, 1>, scalar_prefetch = 0 : i64, scratch_operands = 1 : i64, tpu.core_type = #tpu.core_type<tc>, window_params = [{transform_indices = @transform_0, window_bounds = array<i64: 16, 32>}, {transform_indices = @transform_1, window_bounds = array<i64: 32, 96>}, {transform_indices = @transform_2, window_bounds = array<i64: 16, 96>}]} {
    %c0_i32 = arith.constant 0 : i32
    %0 = arith.cmpi eq, %arg2, %c0_i32 : i32
    %1 = arith.extui %0 : i1 to i32
    %c0_i32_0 = arith.constant 0 : i32
    %2 = arith.cmpi ne, %1, %c0_i32_0 : i32
    scf.if %2 {
      %cst_10 = arith.constant 0.000000e+00 : f32
      %12 = vector.broadcast %cst_10 : f32 to vector<16x96xf32>
      %c0_11 = arith.constant 0 : index
      %c0_12 = arith.constant 0 : index
      %13 = vector.load %arg6[%c0_11, %c0_12] : memref<16x96xf32, #tpu.memory_space<vmem>>, vector<16x96xf32>
      tpu.vector_store %arg6[%c0_11, %c0_12], %12 {strides = array<i32>} : memref<16x96xf32, #tpu.memory_space<vmem>>, vector<16x96xf32>,
    } else {
    }
    %c0 = arith.constant 0 : index
    %c0_1 = arith.constant 0 : index
    %3 = vector.load %arg6[%c0, %c0_1] : memref<16x96xf32, #tpu.memory_space<vmem>>, vector<16x96xf32>
    %c0_2 = arith.constant 0 : index
    %c0_3 = arith.constant 0 : index
    %4 = vector.load %arg3[%c0_2, %c0_3] : memref<16x32xf32, #tpu.memory_space<vmem>>, vector<16x32xf32>
    %c0_4 = arith.constant 0 : index
    %c0_5 = arith.constant 0 : index
    %5 = vector.load %arg4[%c0_4, %c0_5] : memref<32x96xf32, #tpu.memory_space<vmem>>, vector<32x96xf32>
    %cst = arith.constant dense<0.000000e+00> : vector<16x96xf32>
    %6 = tpu.matmul %4, %5, %cst {dimension_numbers = #tpu.dot_dimension_numbers<[1], [0], [0], [1], [0, 0, 1, 1], [], []>} : vector<16x32xf32>, vector<32x96xf32>, vector<16x96xf32> -> vector<16x96xf32>
    %7 = arith.addf %3, %6 : vector<16x96xf32>
    %c0_6 = arith.constant 0 : index
    %c0_7 = arith.constant 0 : index
    %8 = vector.load %arg6[%c0_6, %c0_7] : memref<16x96xf32, #tpu.memory_space<vmem>>, vector<16x96xf32>
    tpu.vector_store %arg6[%c0_6, %c0_7], %7 {strides = array<i32>} : memref<16x96xf32, #tpu.memory_space<vmem>>, vector<16x96xf32>,
    %c0_i32_8 = arith.constant 0 : i32
    %9 = arith.cmpi eq, %arg2, %c0_i32_8 : i32
    %10 = arith.extui %9 : i1 to i32
    %c0_i32_9 = arith.constant 0 : i32
    %11 = arith.cmpi ne, %10, %c0_i32_9 : i32
    scf.if %11 {
      %c0_10 = arith.constant 0 : index
      %c0_11 = arith.constant 0 : index
      %12 = vector.load %arg6[%c0_10, %c0_11] : memref<16x96xf32, #tpu.memory_space<vmem>>, vector<16x96xf32>
      %c0_12 = arith.constant 0 : index
      %c0_13 = arith.constant 0 : index
      %13 = vector.load %arg5[%c0_12, %c0_13] : memref<16x96xf32, #tpu.memory_space<vmem>>, vector<16x96xf32>
      tpu.vector_store %arg5[%c0_12, %c0_13], %12 {strides = array<i32>} : memref<16x96xf32, #tpu.memory_space<vmem>>, vector<16x96xf32>,
    } else {
    }
    return
  }
  func.func @transform_0(%arg0: i32, %arg1: i32, %arg2: i32) -> (i32, i32) {
    %c0_i32 = arith.constant 0 : i32
    return %arg0, %arg2 : i32, i32
  }
  func.func @transform_1(%arg0: i32, %arg1: i32, %arg2: i32) -> (i32, i32) {
    %c0_i32 = arith.constant 0 : i32
    return %arg2, %arg1 : i32, i32
  }
  func.func @transform_2(%arg0: i32, %arg1: i32, %arg2: i32) -> (i32, i32) {
    %c0_i32 = arith.constant 0 : i32
    return %arg0, %arg1 : i32, i32
  }
}

</mosaic_0001>

<bundles_post_ra>
// kernel: tpu_custom_call.1
= control target key start
LH: loop header
LB: loop body
LE: loop exit
PB: predicated region body
PF: predicated region fallthrough
CT: control target
= control target key end

     0   :  { %7 = vsyncpa [#allocation4], 0  ;;  %s256_s0 = inlined_call_operand.hbm [shape: f32[16,32], index: 0, kind: input, shape index: {}]   ;;  %s257_s1 = inlined_call_operand.hbm [shape: f32[32,96], index: 1, kind: input, shape index: {}]   ;;  %s258_s2 = inlined_call_operand.hbm [shape: f32[16,96], index: 2, kind: output, shape index: {}]  }
   0x1   :  { %8 = vsyncpa [#allocation7], 0 }
   0x2   :  { %9 = vsyncpa [#allocation5], 0  ;;  %s14_s11 = sshll.u32 %s256_s0, 4  ;;  %s211_s12 = smov [#allocation3]   ;;  %s15_s11 = int_to_ptr.hbm [resolvable:$true] %s14_s11 }
   0x3   :  { %s16_s13 = sshll.u32 %s211_s12, 4  ;;  %s27_s16 = sshll.u32 %s257_s1, 4  ;;  %s17_s13 = int_to_ptr.vmem [resolvable:$true] %s16_s13  ;;  %s28_s16 = int_to_ptr.hbm [resolvable:$true] %s27_s16 }
   0x4   :  { %s212_s17 = smov 128   ;;  %s213_s18 = smov 8  }
   0x5   :  { %22 = dma.hbm_to_vmem [thread:$0]  %s15_s11, 256, %s17_s13, [#allocation4], %s212_s17, %s212_s17, %s213_s18  }
   0x6   :  { %s214_s19 = smov [#allocation6]  }
   0x7   :  { %s29_s20 = sshll.u32 %s214_s19, 4  ;;  %s30_s20 = int_to_ptr.vmem [resolvable:$true] %s29_s20 }
   0x8   :  { %35 = dma.hbm_to_vmem [thread:$0]  %s28_s16, 512, %s30_s20, [#allocation7], %s212_s17, %s212_s17, %s213_s18  }
   0x9   :  { %205 = dma.done.wait [#allocation4], 256  }
   0xa   :  { %206 = vsyncadd [#allocation4], 4294967040 }
   0xb   :  { %207 = dma.done.wait [#allocation7], 512  }
   0xc   :  { %208 = vsyncadd [#allocation7], 4294966784  ;;  %vm48_vm0 = vcmask 785408   ;;  %v215_v0 = vmov 0.0   ;;  %v58_v1 = vld [vmem:[#allocation6 + $0x18] sm:$0xff]  ;;  %v57_v2 = vld [vmem:[#allocation6 + $0x10] sm:$0xff] }
   0xd   :  { %49 = vst.msk [vmem:[#allocation2] sm:$0xff] %vm48_vm0, %v215_v0  ;;  %78 = vmatpush.msra.mxu0 %v58_v1  ;;  %123 = vmatpush.msra.mxu1 %v58_v1  ;;  %v56_v3 = vld [vmem:[#allocation6 + $0x8] sm:$0xff]  ;;  %v55_v4 = vld [vmem:[#allocation6] sm:$0xff]  ;;  %v53_v5 = vld [vmem:[#allocation3] sm:$0xff]  ;;  %vm59_vm1 = vcmask 261120   ;;  %s216_s0 = smov [#allocation8]  }
   0xe   :  { %50 = vst.msk [vmem:[#allocation2 + $0x8] sm:$0xff] %vm48_vm0, %v215_v0  ;;  %v54_v6 = vld [vmem:[#allocation3 + $0x8] sm:$0xff]  ;;  %s105_s1 = sshll.u32 %s216_s0, 4  ;;  %s107_s23 = sshll.u32 %s258_s2, 4  ;;  %s106_s1 = int_to_ptr.vmem [resolvable:$true] %s105_s1  ;;  %s108_s23 = int_to_ptr.hbm [resolvable:$true] %s107_s23 }
   0xf   :  { %79 = vmatpush.msra.mxu0 %v57_v2  ;;  %124 = vmatpush.msra.mxu1 %v57_v2 }
  0x11   :  { %80 = vmatpush.msra.mxu0 %v56_v3  ;;  %125 = vmatpush.msra.mxu1 %v56_v3 }
  0x13   :  { %81 = vmatpush.msra.mxu0 %v55_v4  ;;  %126 = vmatpush.msra.mxu1 %v55_v4 }
  0x14   :  { %121 = vmatmul.msk.f32.vlgmr.msra.gmra.mxu0 %vm59_vm1, %v53_v5  ;;  %122 = vmatmul.msk.f32.vlgmr.msra.gmra.mxu1 %vm59_vm1, %v54_v6  ;;  %v51_v7 = vld [vmem:[#allocation2] sm:$0xff] }
  0x15   :  { %v52_v8 = vld [vmem:[#allocation2 + $0x8] sm:$0xff] }
  0x91   :  { %v83_v9 = vpop.f32.mrf.mxu0  ;;  %v86_v10 = vpop.f32.mrf.mxu1 }
  0x92   :  { %v89_v11 = vadd.f32 %v83_v9, %v51_v7  ;;  %v90_v12 = vadd.f32 %v86_v10, %v52_v8 }
  0x94   :  { %92 = vst.msk [vmem:[#allocation2] sm:$0xff] %vm48_vm0, %v89_v11 }
  0x95   :  { %93 = vst.msk [vmem:[#allocation2 + $0x8] sm:$0xff] %vm48_vm0, %v90_v12 }
  0x9b   :  { %v97_v13 = vld [vmem:[#allocation2] sm:$0xff] }
  0x9c   :  { %v98_v14 = vld [vmem:[#allocation2 + $0x8] sm:$0xff]  ;;  %99 = vst.msk [vmem:[#allocation8] sm:$0xff] %vm48_vm0, %v97_v13 }
  0x9d   :  { %100 = vst.msk [vmem:[#allocation8 + $0x8] sm:$0xff] %vm48_vm0, %v98_v14 }
  0x9e   :  { %113 = dma.vmem_to_hbm [thread:$0]  %s106_s1, 256, %s108_s23, [#allocation5], %s212_s17, %s212_s17, %s213_s18  }
  0x9f   :  { %209 = dma.done.wait [#allocation5], 256  }
  0xa0   :  { %210 = vsyncadd [#allocation5], 4294967040 }
  0xa1   :  { %118 = vsyncpa [#allocation4], 1 }
  0xa2   :  { %119 = vsyncpa [#allocation7], 1 }
  0xa3   :  { %120 = vsyncpa [#allocation5], 1 }

</bundles_post_ra>
